<compile_context>
chip_gen: v7x
topology: tpu7x:2x2x1
jax: 0.10.0
libtpu: 0.0.40
codegen_flags: <defaults>
</compile_context>

<pallas_src>
import functools

import jax
import jax.numpy as jnp
from jax.experimental import pallas as pl
from jax.experimental.pallas import tpu as pltpu

LEAKY_ATT = 0.2      # Model leaky_rate
LEAKY_FC = 0.01      # default nn.LeakyReLU slope inside self.fc
POLY_ORDER = 3
ALPHA_GEGEN = 1.0
FREQ_SAMPLE = 6


# ---------------------------------------------------------------------------
# Fused kernel: attention + Laplacian + Gegenbauer mean + forecast head
# ---------------------------------------------------------------------------
def _fused_kernel(xs_ref, pmat_ref, pcol_ref, out_ref, *, B, T, horizon):
    N = T
    BT = B * T
    BH = B * horizon

    xs = xs_ref[...]                                    # (B*T, N) stacked batches

    # packed column params: [w_key(N) | w_query(N) | b1_rep(BT) | b2_rep(BH)]
    w_key = pcol_ref[0:N, :]                            # (N, 1)
    w_query = pcol_ref[N:2 * N, :]                      # (N, 1)
    b1c = pcol_ref[2 * N:2 * N + BT, :]                 # (B*T, 1)
    b2c = pcol_ref[2 * N + BT:2 * N + BT + BH, :]       # (B*h, 1)

    # ---- graph attention: two matvecs, per-batch unrolled softmax ----------
    k_all = jnp.dot(xs, w_key, preferred_element_type=jnp.float32)     # (B*T, 1)
    q_all = jnp.dot(xs, w_query, preferred_element_type=jnp.float32)   # (B*T, 1)

    a_sum = jnp.zeros((T, T), jnp.float32)
    for b in range(B):                                  # B is tiny -> unrolled
        k_b = k_all[b * T:(b + 1) * T, :]               # (T, 1), sublane slice
        q_b = q_all[b * T:(b + 1) * T, :]               # (T, 1)
        logits = k_b + q_b.T                            # logits[i,j] = k[i] + q[j]
        logits = jnp.where(logits >= 0, logits, LEAKY_ATT * logits)
        m = jnp.max(logits, axis=1, keepdims=True)
        e = jnp.exp(logits - m)
        s = jnp.sum(e, axis=1, keepdims=True)
        a_sum = a_sum + e * pl.reciprocal(s)            # exact rcp -> keeps 1e-4 tol
    # TODO(synk): Dropout(p=0.5) on attention is inference-mode identity here.
    a_mean = a_sum * (1.0 / B)                          # (T, T)

    degree = jnp.sum(a_mean, axis=1, keepdims=True)     # (T, 1) (pre-symmetrization)
    a_sym = 0.5 * (a_mean + a_mean.T)
    out_ref[0:T, :] = a_sym                             # attention output rows

    # ---- normalized Laplacian + mean of Gegenbauer polynomials -------------
    row = jax.lax.broadcasted_iota(jnp.int32, (T, T), 0)
    col = jax.lax.broadcasted_iota(jnp.int32, (T, T), 1)
    eye = (row == col).astype(jnp.float32)

    d_hat = 1.0 / (jnp.sqrt(degree) + 1e-7)             # (T, 1)
    lap = d_hat * (eye * degree - a_sym) * d_hat.reshape(1, T)   # D^-1/2 (D-A) D^-1/2
    M = eye - lap                                        # symmetric

    alpha = ALPHA_GEGEN
    pm2 = eye
    pm1 = 2.0 * alpha * M
    acc = pm2 + pm1
    for k in range(2, POLY_ORDER + 1):
        mp = jnp.dot(M, pm1, preferred_element_type=jnp.float32)
        pk = (2.0 * (k + alpha - 1.0) * mp - (k + 2.0 * alpha - 2.0) * pm2) / k
        acc = acc + pk
        pm2, pm1 = pm1, pk
    # acc is symmetric (polynomials in a symmetric M), so no transpose needed.
    lbar = acc * (1.0 / (POLY_ORDER + 1))               # mean_k P_k == its transpose

    # ---- graph conv + spectral filter + FC head (k-mean & m_fdm pre-folded)
    # gs rows [b*T:(b+1)*T] == x[b] @ Lbar^T == x[b] @ Lbar  (symmetry)
    gs = jnp.dot(xs, lbar, preferred_element_type=jnp.float32)          # (B*T, N)

    w1bd = pmat_ref[0:BT, :]                            # (B*T, B*T) block-diag w1eff^T
    w2bd = pmat_ref[BT:BT + BH, :]                      # (B*h, B*T) block-diag w2
    h = jnp.dot(w1bd, gs, preferred_element_type=jnp.float32) + b1c     # (B*T, N)
    h = jnp.where(h >= 0, h, LEAKY_FC * h)
    fc = jnp.dot(w2bd, h, preferred_element_type=jnp.float32) + b2c     # (B*h, N)
    out_ref[T:T + BH, :] = fc                           # single lane-dense store


# ---------------------------------------------------------------------------
# Wrapper
# ---------------------------------------------------------------------------
def model_forward(x, params):
    B, T, N = x.shape
    assert T == N, "PyTorch reference requires time_step == units"
    horizon = params["w2"].shape[0]
    S = params["w_fdm"].shape[0]
    BT, BH = B * T, B * horizon

    # temporal_fdm collapsed to one real matrix (real input):
    #   ifft_T( fft(x)[:, :S] @ W , n=T ).real  ==  x @ Re(F @ W @ G) / T
    t = jnp.arange(T, dtype=jnp.float32)
    f = jnp.arange(S, dtype=jnp.float32)
    ang_tf = 2.0 * jnp.pi * jnp.outer(t, f) / T          # (T, S)
    ang_ft = 2.0 * jnp.pi * jnp.outer(f, t) / T          # (S, T)
    Fr, Fi = jnp.cos(ang_tf), -jnp.sin(ang_tf)
    Gr, Gi = jnp.cos(ang_ft), jnp.sin(ang_ft)
    W = params["w_fdm"].astype(jnp.float32)
    m_fdm = ((Fr @ W @ Gr) - (Fi @ W @ Gi)) / T          # (T, T), real

    # Fold the spectral filter into fc layer 1, then build block-diagonal head
    # matrices so the kernel does two stacked matmuls for all batches at once.
    w1eff_t = (params["w1"].astype(jnp.float32) @ m_fdm.T)          # (T, T)
    eye_b = jnp.eye(B, dtype=jnp.float32)
    w1bd = jnp.kron(eye_b, w1eff_t)                                 # (B*T, B*T)
    w2bd = jnp.kron(eye_b, params["w2"].astype(jnp.float32))        # (B*h, B*T)
    pmat = jnp.concatenate([w1bd, w2bd], axis=0)                    # (B*T+B*h, B*T)

    pcol = jnp.concatenate([
        params["w_key"].reshape(N, 1),
        params["w_query"].reshape(N, 1),
        jnp.tile(params["b1"].reshape(T), B).reshape(BT, 1),
        jnp.tile(params["b2"].reshape(horizon), B).reshape(BH, 1),
    ], axis=0).astype(jnp.float32)                                  # (2N+BT+BH, 1)

    xs = x.astype(jnp.float32).reshape(BT, N)            # stacked batches

    out = pl.pallas_call(
        functools.partial(_fused_kernel, B=B, T=T, horizon=horizon),
        out_shape=jax.ShapeDtypeStruct((T + BH, N), jnp.float32),
        grid=(1,),
        in_specs=[pl.BlockSpec((BT, N), lambda i: (0, 0)),
                  pl.BlockSpec((BT + BH, BT), lambda i: (0, 0)),
                  pl.BlockSpec((2 * N + BT + BH, 1), lambda i: (0, 0))],
        out_specs=pl.BlockSpec((T + BH, N), lambda i: (0, 0)),
        compiler_params=pltpu.CompilerParams(dimension_semantics=("arbitrary",)),
    )(xs, pmat, pcol)

    attention = out[0:T, :]                              # (T, T)
    fc = out[T:T + BH, :].reshape(B, horizon, N)

    if horizon == 1:
        # torch: forecast.unsqueeze(1).squeeze(-1) -> (B, 1, 1, N)
        forecast = fc.reshape(B, 1, 1, N)
    else:
        # TODO(synk): horizon>1 branch in the reference applies a 3-index permute to a
        # 4-D tensor (invalid); only horizon==1 is exercised; we return (B, horizon, N).
        forecast = fc
    return forecast, attention


# ---------------------------------------------------------------------------
# Pure-JAX reference (mirrors the PyTorch math) for a sanity check
# ---------------------------------------------------------------------------
def reference_forward(x, params):
    B, T, N = x.shape
    hp = jax.lax.Precision.HIGHEST
    key = jnp.einsum('btn,no->bt', x, params["w_key"], precision=hp)
    query = jnp.einsum('btn,no->bt', x, params["w_query"], precision=hp)
    logits = key[:, :, None] + query[:, None, :]
    logits = jnp.where(logits >= 0, logits, LEAKY_ATT * logits)
    att = jax.nn.softmax(logits, axis=2)
    a_mean = jnp.mean(att, axis=0)
    degree = jnp.sum(a_mean, axis=1)
    a_sym = 0.5 * (a_mean + a_mean.T)
    d_hat = 1.0 / (jnp.sqrt(degree) + 1e-7)
    lap = d_hat[:, None] * (jnp.diag(degree) - a_sym) * d_hat[None, :]
    eye = jnp.eye(T, dtype=jnp.float32)
    M = eye - lap
    alpha = ALPHA_GEGEN
    polys = [eye, 2.0 * alpha * M]
    for k in range(2, POLY_ORDER + 1):
        pk = (2.0 * (k + alpha - 1.0) * jnp.matmul(M, polys[-1], precision=hp)
              - (k + 2.0 * alpha - 2.0) * polys[-2]) / k
        polys.append(pk)
    mul_l = jnp.stack(polys, axis=0)

    X = jnp.transpose(x, (0, 2, 1))[:, None]                       # (B,1,N,T)
    Y = jnp.einsum('knm,bcmf->bkcnf', mul_l, X, precision=hp)      # (B,K+1,1,N,T)
    Yf = jnp.fft.fft(Y.astype(jnp.complex64), axis=-1)[..., :FREQ_SAMPLE]
    Yfil = jnp.einsum('...f,fg->...g', Yf,
                      params["w_fdm"].astype(jnp.complex64), precision=hp)
    Yi = jnp.fft.ifft(Yfil, n=T, axis=-1).real.astype(jnp.float32)
    Z = Yi.mean(axis=1)                                            # (B,1,N,T)
    H = jnp.einsum('...t,ht->...h', Z, params["w1"], precision=hp) + params["b1"]
    H = jnp.where(H >= 0, H, LEAKY_FC * H)
    Fc = jnp.einsum('...t,ht->...h', H, params["w2"], precision=hp) + params["b2"]
    return Fc.reshape(B, 1, 1, N), a_sym


if __name__ == "__main__":
    B = 2
    units = time_step = 16        # model only type-checks when these match
    horizon = 1

    key = jax.random.PRNGKey(0)
    ks = jax.random.split(key, 8)

    bound_attn = 1.414 * (6.0 / (units + 1)) ** 0.5       # xavier_uniform, gain=1.414
    bound_fc = 1.0 / (time_step ** 0.5)

    params = {
        "w_key":   jax.random.uniform(ks[0], (units, 1), jnp.float32, -bound_attn, bound_attn),
        "w_query": jax.random.uniform(ks[1], (units, 1), jnp.float32, -bound_attn, bound_attn),
        "w1": jax.random.uniform(ks[2], (time_step, time_step), jnp.float32, -bound_fc, bound_fc),
        "b1": jax.random.uniform(ks[3], (time_step,), jnp.float32, -bound_fc, bound_fc),
        "w2": jax.random.uniform(ks[4], (horizon, time_step), jnp.float32, -bound_fc, bound_fc),
        "b2": jax.random.uniform(ks[5], (horizon,), jnp.float32, -bound_fc, bound_fc),
        "w_fdm": jax.random.normal(ks[6], (FREQ_SAMPLE, FREQ_SAMPLE), jnp.float32),
    }

    x = jax.random.normal(ks[7], (B, time_step, units), jnp.float32)

    fwd = jax.jit(model_forward)
    forecast, attention = jax.block_until_ready(fwd(x, params))
    ref_forecast, ref_attention = jax.block_until_ready(reference_forward(x, params))

    assert forecast.shape == (B, 1, 1, units), forecast.shape
    assert attention.shape == (time_step, time_step), attention.shape
    assert jnp.allclose(attention, ref_attention, atol=1e-4, rtol=1e-3), \
        "attention mismatch"
    assert jnp.allclose(forecast, ref_forecast, atol=1e-2, rtol=1e-2), \
        "forecast mismatch"

    print("KERNEL_OK")
</pallas_src>

<mosaic_0001>
module attributes {stable_mosaic.version = 11 : i64} {
  func.func @_fused_kernel(%arg0: i32, %arg1: memref<32x16xf32, #tpu.memory_space<vmem>>, %arg2: memref<34x32xf32, #tpu.memory_space<vmem>>, %arg3: memref<66x1xf32, #tpu.memory_space<vmem>>, %arg4: memref<18x16xf32, #tpu.memory_space<vmem>>) attributes {dimension_semantics = [#tpu.dimension_semantics<arbitrary>], iteration_bounds = array<i64: 1>, scalar_prefetch = 0 : i64, scratch_operands = 0 : i64, tpu.core_type = #tpu.core_type<tc>, window_params = [{pipeline_mode = #tpu.pipeline_mode<synchronous>, transform_indices = @transform_0, window_bounds = array<i64: 32, 16>}, {pipeline_mode = #tpu.pipeline_mode<synchronous>, transform_indices = @transform_1, window_bounds = array<i64: 34, 32>}, {pipeline_mode = #tpu.pipeline_mode<synchronous>, transform_indices = @transform_2, window_bounds = array<i64: 66, 1>}, {pipeline_mode = #tpu.pipeline_mode<synchronous>, transform_indices = @transform_3, window_bounds = array<i64: 18, 16>}]} {
    %c0 = arith.constant 0 : index
    %c0_0 = arith.constant 0 : index
    %0 = vector.load %arg1[%c0, %c0_0] : memref<32x16xf32, #tpu.memory_space<vmem>>, vector<32x16xf32>
    %c0_1 = arith.constant 0 : index
    %c0_2 = arith.constant 0 : index
    %1 = vector.load %arg3[%c0_1, %c0_2] : memref<66x1xf32, #tpu.memory_space<vmem>>, vector<16x1xf32>
    %c16 = arith.constant 16 : index
    %c0_3 = arith.constant 0 : index
    %2 = vector.load %arg3[%c16, %c0_3] : memref<66x1xf32, #tpu.memory_space<vmem>>, vector<16x1xf32>
    %c32 = arith.constant 32 : index
    %c0_4 = arith.constant 0 : index
    %3 = vector.load %arg3[%c32, %c0_4] : memref<66x1xf32, #tpu.memory_space<vmem>>, vector<32x1xf32>
    %c64 = arith.constant 64 : index
    %c0_5 = arith.constant 0 : index
    %4 = vector.load %arg3[%c64, %c0_5] : memref<66x1xf32, #tpu.memory_space<vmem>>, vector<2x1xf32>
    %cst = arith.constant dense<0.000000e+00> : vector<32x1xf32>
    %5 = tpu.matmul %0, %1, %cst {dimension_numbers = #tpu.dot_dimension_numbers<[1], [0], [0], [1], [0, 0, 1, 1], [], []>} : vector<32x16xf32>, vector<16x1xf32>, vector<32x1xf32> -> vector<32x1xf32>
    %cst_6 = arith.constant dense<0.000000e+00> : vector<32x1xf32>
    %6 = tpu.matmul %0, %2, %cst_6 {dimension_numbers = #tpu.dot_dimension_numbers<[1], [0], [0], [1], [0, 0, 1, 1], [], []>} : vector<32x16xf32>, vector<16x1xf32>, vector<32x1xf32> -> vector<32x1xf32>
    %cst_7 = arith.constant 0.000000e+00 : f32
    %7 = vector.broadcast %cst_7 : f32 to vector<16x16xf32>
    %8 = vector.extract_strided_slice %5 {offsets = [0, 0], sizes = [16, 1], strides = [1, 1]} : vector<32x1xf32> to vector<16x1xf32>
    %9 = vector.extract_strided_slice %6 {offsets = [0, 0], sizes = [16, 1], strides = [1, 1]} : vector<32x1xf32> to vector<16x1xf32>
    %10 = tpu.transpose %9, [1, 0] : vector<16x1xf32> -> vector<1x16xf32>
    %11 = vector.broadcast %8 : vector<16x1xf32> to vector<16x16xf32>
    %12 = vector.broadcast %10 : vector<1x16xf32> to vector<16x16xf32>
    %13 = arith.addf %11, %12 : vector<16x16xf32>
    %cst_8 = arith.constant 0.000000e+00 : f32
    %14 = vector.broadcast %cst_8 : f32 to vector<16x16xf32>
    %15 = arith.cmpf oge, %13, %14 : vector<16x16xf32>
    %cst_9 = arith.constant 2.000000e-01 : f32
    %16 = vector.broadcast %cst_9 : f32 to vector<16x16xf32>
    %17 = arith.mulf %16, %13 : vector<16x16xf32>
    %18 = arith.select %15, %13, %17 : vector<16x16xi1>, vector<16x16xf32>
    %cst_10 = arith.constant dense<0xFF800000> : vector<16xf32>
    %19 = vector.multi_reduction <maximumf>, %18, %cst_10 [1] : vector<16x16xf32> to vector<16xf32>
    %20 = vector.shape_cast %19 : vector<16xf32> to vector<16x1xf32>
    %21 = vector.broadcast %20 : vector<16x1xf32> to vector<16x16xf32>
    %22 = arith.subf %18, %21 : vector<16x16xf32>
    %23 = math.exp %22 : vector<16x16xf32>
    %cst_11 = arith.constant dense<0.000000e+00> : vector<16xf32>
    %24 = vector.multi_reduction <add>, %23, %cst_11 [1] : vector<16x16xf32> to vector<16xf32>
    %25 = vector.shape_cast %24 : vector<16xf32> to vector<16x1xf32>
    %26 = tpu.reciprocal %25 : vector<16x1xf32> -> vector<16x1xf32>
    %27 = vector.broadcast %26 : vector<16x1xf32> to vector<16x16xf32>
    %28 = arith.mulf %23, %27 : vector<16x16xf32>
    %29 = arith.addf %7, %28 : vector<16x16xf32>
    %30 = vector.extract_strided_slice %5 {offsets = [16, 0], sizes = [16, 1], strides = [1, 1]} : vector<32x1xf32> to vector<16x1xf32>
    %31 = vector.extract_strided_slice %6 {offsets = [16, 0], sizes = [16, 1], strides = [1, 1]} : vector<32x1xf32> to vector<16x1xf32>
    %32 = tpu.transpose %31, [1, 0] : vector<16x1xf32> -> vector<1x16xf32>
    %33 = vector.broadcast %30 : vector<16x1xf32> to vector<16x16xf32>
    %34 = vector.broadcast %32 : vector<1x16xf32> to vector<16x16xf32>
    %35 = arith.addf %33, %34 : vector<16x16xf32>
    %cst_12 = arith.constant 0.000000e+00 : f32
    %36 = vector.broadcast %cst_12 : f32 to vector<16x16xf32>
    %37 = arith.cmpf oge, %35, %36 : vector<16x16xf32>
    %cst_13 = arith.constant 2.000000e-01 : f32
    %38 = vector.broadcast %cst_13 : f32 to vector<16x16xf32>
    %39 = arith.mulf %38, %35 : vector<16x16xf32>
    %40 = arith.select %37, %35, %39 : vector<16x16xi1>, vector<16x16xf32>
    %cst_14 = arith.constant dense<0xFF800000> : vector<16xf32>
    %41 = vector.multi_reduction <maximumf>, %40, %cst_14 [1] : vector<16x16xf32> to vector<16xf32>
    %42 = vector.shape_cast %41 : vector<16xf32> to vector<16x1xf32>
    %43 = vector.broadcast %42 : vector<16x1xf32> to vector<16x16xf32>
    %44 = arith.subf %40, %43 : vector<16x16xf32>
    %45 = math.exp %44 : vector<16x16xf32>
    %cst_15 = arith.constant dense<0.000000e+00> : vector<16xf32>
    %46 = vector.multi_reduction <add>, %45, %cst_15 [1] : vector<16x16xf32> to vector<16xf32>
    %47 = vector.shape_cast %46 : vector<16xf32> to vector<16x1xf32>
    %48 = tpu.reciprocal %47 : vector<16x1xf32> -> vector<16x1xf32>
    %49 = vector.broadcast %48 : vector<16x1xf32> to vector<16x16xf32>
    %50 = arith.mulf %45, %49 : vector<16x16xf32>
    %51 = arith.addf %29, %50 : vector<16x16xf32>
    %cst_16 = arith.constant 5.000000e-01 : f32
    %52 = vector.broadcast %cst_16 : f32 to vector<16x16xf32>
    %53 = arith.mulf %51, %52 : vector<16x16xf32>
    %cst_17 = arith.constant dense<0.000000e+00> : vector<16xf32>
    %54 = vector.multi_reduction <add>, %53, %cst_17 [1] : vector<16x16xf32> to vector<16xf32>
    %55 = vector.shape_cast %54 : vector<16xf32> to vector<16x1xf32>
    %56 = tpu.transpose %53, [1, 0] : vector<16x16xf32> -> vector<16x16xf32>
    %57 = arith.addf %53, %56 : vector<16x16xf32>
    %cst_18 = arith.constant 5.000000e-01 : f32
    %58 = vector.broadcast %cst_18 : f32 to vector<16x16xf32>
    %59 = arith.mulf %58, %57 : vector<16x16xf32>
    %c0_19 = arith.constant 0 : index
    %c0_20 = arith.constant 0 : index
    %60 = vector.load %arg4[%c0_19, %c0_20] : memref<18x16xf32, #tpu.memory_space<vmem>>, vector<16x16xf32>
    tpu.vector_store %arg4[%c0_19, %c0_20], %59 {strides = array<i32>} : memref<18x16xf32, #tpu.memory_space<vmem>>, vector<16x16xf32>,
    %61 = tpu.iota {dimensions = array<i32: 0>} : vector<16x16xi32>
    %62 = tpu.iota {dimensions = array<i32: 1>} : vector<16x16xi32>
    %63 = arith.cmpi eq, %61, %62 : vector<16x16xi32>
    %64 = arith.extui %63 : vector<16x16xi1> to vector<16x16xi32>
    %65 = arith.sitofp %64 : vector<16x16xi32> to vector<16x16xf32>
    %66 = math.sqrt %55 : vector<16x1xf32>
    %cst_21 = arith.constant 1.000000e-07 : f32
    %67 = vector.broadcast %cst_21 : f32 to vector<16x1xf32>
    %68 = arith.addf %66, %67 : vector<16x1xf32>
    %cst_22 = arith.constant 1.000000e+00 : f32
    %69 = vector.broadcast %cst_22 : f32 to vector<16x1xf32>
    %70 = arith.divf %69, %68 : vector<16x1xf32>
    %71 = vector.broadcast %55 : vector<16x1xf32> to vector<16x16xf32>
    %72 = arith.mulf %65, %71 : vector<16x16xf32>
    %73 = arith.subf %72, %59 : vector<16x16xf32>
    %74 = vector.broadcast %70 : vector<16x1xf32> to vector<16x16xf32>
    %75 = arith.mulf %74, %73 : vector<16x16xf32>
    %76 = vector.shape_cast %70 : vector<16x1xf32> to vector<1x16xf32>
    %77 = vector.broadcast %76 : vector<1x16xf32> to vector<16x16xf32>
    %78 = arith.mulf %75, %77 : vector<16x16xf32>
    %79 = arith.subf %65, %78 : vector<16x16xf32>
    %cst_23 = arith.constant 2.000000e+00 : f32
    %80 = vector.broadcast %cst_23 : f32 to vector<16x16xf32>
    %81 = arith.mulf %80, %79 : vector<16x16xf32>
    %82 = arith.addf %65, %81 : vector<16x16xf32>
    %cst_24 = arith.constant dense<0.000000e+00> : vector<16x16xf32>
    %83 = tpu.matmul %79, %81, %cst_24 {dimension_numbers = #tpu.dot_dimension_numbers<[1], [0], [0], [1], [0, 0, 1, 1], [], []>} : vector<16x16xf32>, vector<16x16xf32>, vector<16x16xf32> -> vector<16x16xf32>
    %cst_25 = arith.constant 4.000000e+00 : f32
    %84 = vector.broadcast %cst_25 : f32 to vector<16x16xf32>
    %85 = arith.mulf %84, %83 : vector<16x16xf32>
    %cst_26 = arith.constant 2.000000e+00 : f32
    %86 = vector.broadcast %cst_26 : f32 to vector<16x16xf32>
    %87 = arith.mulf %86, %65 : vector<16x16xf32>
    %88 = arith.subf %85, %87 : vector<16x16xf32>
    %cst_27 = arith.constant 2.000000e+00 : f32
    %89 = vector.broadcast %cst_27 : f32 to vector<16x16xf32>
    %90 = arith.divf %88, %89 : vector<16x16xf32>
    %91 = arith.addf %82, %90 : vector<16x16xf32>
    %cst_28 = arith.constant dense<0.000000e+00> : vector<16x16xf32>
    %92 = tpu.matmul %79, %90, %cst_28 {dimension_numbers = #tpu.dot_dimension_numbers<[1], [0], [0], [1], [0, 0, 1, 1], [], []>} : vector<16x16xf32>, vector<16x16xf32>, vector<16x16xf32> -> vector<16x16xf32>
    %cst_29 = arith.constant 6.000000e+00 : f32
    %93 = vector.broadcast %cst_29 : f32 to vector<16x16xf32>
    %94 = arith.mulf %93, %92 : vector<16x16xf32>
    %cst_30 = arith.constant 3.000000e+00 : f32
    %95 = vector.broadcast %cst_30 : f32 to vector<16x16xf32>
    %96 = arith.mulf %95, %81 : vector<16x16xf32>
    %97 = arith.subf %94, %96 : vector<16x16xf32>
    %cst_31 = arith.constant 3.000000e+00 : f32
    %98 = vector.broadcast %cst_31 : f32 to vector<16x16xf32>
    %99 = arith.divf %97, %98 : vector<16x16xf32>
    %100 = arith.addf %91, %99 : vector<16x16xf32>
    %cst_32 = arith.constant 2.500000e-01 : f32
    %101 = vector.broadcast %cst_32 : f32 to vector<16x16xf32>
    %102 = arith.mulf %100, %101 : vector<16x16xf32>
    %cst_33 = arith.constant dense<0.000000e+00> : vector<32x16xf32>
    %103 = tpu.matmul %0, %102, %cst_33 {dimension_numbers = #tpu.dot_dimension_numbers<[1], [0], [0], [1], [0, 0, 1, 1], [], []>} : vector<32x16xf32>, vector<16x16xf32>, vector<32x16xf32> -> vector<32x16xf32>
    %c0_34 = arith.constant 0 : index
    %c0_35 = arith.constant 0 : index
    %104 = vector.load %arg2[%c0_34, %c0_35] : memref<34x32xf32, #tpu.memory_space<vmem>>, vector<32x32xf32>
    %c32_36 = arith.constant 32 : index
    %c0_37 = arith.constant 0 : index
    %105 = vector.load %arg2[%c32_36, %c0_37] : memref<34x32xf32, #tpu.memory_space<vmem>>, vector<2x32xf32>
    %cst_38 = arith.constant dense<0.000000e+00> : vector<32x16xf32>
    %106 = tpu.matmul %104, %103, %cst_38 {dimension_numbers = #tpu.dot_dimension_numbers<[1], [0], [0], [1], [0, 0, 1, 1], [], []>} : vector<32x32xf32>, vector<32x16xf32>, vector<32x16xf32> -> vector<32x16xf32>
    %107 = vector.broadcast %3 : vector<32x1xf32> to vector<32x16xf32>
    %108 = arith.addf %106, %107 : vector<32x16xf32>
    %cst_39 = arith.constant 0.000000e+00 : f32
    %109 = vector.broadcast %cst_39 : f32 to vector<32x16xf32>
    %110 = arith.cmpf oge, %108, %109 : vector<32x16xf32>
    %cst_40 = arith.constant 0.00999999977 : f32
    %111 = vector.broadcast %cst_40 : f32 to vector<32x16xf32>
    %112 = arith.mulf %111, %108 : vector<32x16xf32>
    %113 = arith.select %110, %108, %112 : vector<32x16xi1>, vector<32x16xf32>
    %cst_41 = arith.constant dense<0.000000e+00> : vector<2x16xf32>
    %114 = tpu.matmul %105, %113, %cst_41 {dimension_numbers = #tpu.dot_dimension_numbers<[1], [0], [0], [1], [0, 0, 1, 1], [], []>} : vector<2x32xf32>, vector<32x16xf32>, vector<2x16xf32> -> vector<2x16xf32>
    %115 = vector.broadcast %4 : vector<2x1xf32> to vector<2x16xf32>
    %116 = arith.addf %114, %115 : vector<2x16xf32>
    %c16_42 = arith.constant 16 : index
    %c0_43 = arith.constant 0 : index
    %117 = vector.load %arg4[%c16_42, %c0_43] : memref<18x16xf32, #tpu.memory_space<vmem>>, vector<2x16xf32>
    tpu.vector_store %arg4[%c16_42, %c0_43], %116 {strides = array<i32>} : memref<18x16xf32, #tpu.memory_space<vmem>>, vector<2x16xf32>,
    return
  }
  func.func @transform_0(%arg0: i32) -> (i32, i32) {
    %c0_i32 = arith.constant 0 : i32
    %c0_i32_0 = arith.constant 0 : i32
    %c0_i32_1 = arith.constant 0 : i32
    return %c0_i32, %c0_i32_0 : i32, i32
  }
  func.func @transform_1(%arg0: i32) -> (i32, i32) {
    %c0_i32 = arith.constant 0 : i32
    %c0_i32_0 = arith.constant 0 : i32
    %c0_i32_1 = arith.constant 0 : i32
    return %c0_i32, %c0_i32_0 : i32, i32
  }
  func.func @transform_2(%arg0: i32) -> (i32, i32) {
    %c0_i32 = arith.constant 0 : i32
    %c0_i32_0 = arith.constant 0 : i32
    %c0_i32_1 = arith.constant 0 : i32
    return %c0_i32, %c0_i32_0 : i32, i32
  }
  func.func @transform_3(%arg0: i32) -> (i32, i32) {
    %c0_i32 = arith.constant 0 : i32
    %c0_i32_0 = arith.constant 0 : i32
    %c0_i32_1 = arith.constant 0 : i32
    return %c0_i32, %c0_i32_0 : i32, i32
  }
}

</mosaic_0001>

<bundles_post_ra>
// kernel: tile.12
= control target key start
LH: loop header
LB: loop body
LE: loop exit
PB: predicated region body
PF: predicated region fallthrough
CT: control target
= control target key end

     0   :  { %s22_s0 = inlined_call_operand.vmem [shape: f32[16], index: 0, kind: input, shape index: {}]   ;;  %s23_s1 = inlined_call_operand.vmem [shape: f32[2,16], index: 1, kind: output, shape index: {}]  }
   0x1   :  { %v4_v0 = vld [vmem:[%s22_s0] ss:$0 sm:$0xff] }
   0x2   :  { %5 = vst [vmem:[%s23_s1] sm:$0x3] %v4_v0 }

// kernel: tile.17
= control target key start
LH: loop header
LB: loop body
LE: loop exit
PB: predicated region body
PF: predicated region fallthrough
CT: control target
= control target key end

     0   :  { %s20_s0 = inlined_call_operand.<no memory space> [shape: f32[], index: 0, kind: input, shape index: {}]   ;;  %s21_s1 = inlined_call_operand.vmem [shape: f32[2], index: 1, kind: output, shape index: {}]  }
   0x1   :  { %v2_v0 = vstv %s20_s0 }
   0x2   :  { %3 = vst [vmem:[%s21_s1] sm:$0x1] %v2_v0 }

// kernel: tile.13
= control target key start
LH: loop header
LB: loop body
LE: loop exit
PB: predicated region body
PF: predicated region fallthrough
CT: control target
= control target key end

     0   :  { %vm7_vm0 = vcmask 130048   ;;  %vm13_vm1 = vcmask 261248   ;;  %s39_s0 = inlined_call_operand.vmem [shape: f32[2,16], index: 0, kind: input, shape index: {}]   ;;  %s40_s1 = inlined_call_operand.vmem [shape: f32[32,1], index: 1, kind: output, shape index: {}]  }
   0x1   :  { %v4_v0 = vld [vmem:[%s39_s0] sm:$0x3]  ;;  %s22_s0 = smov 16  }
   0x2   :  { %5 = vst [vmem:[#allocation1] sm:$0x3] %v4_v0 }
   0x9   :  { %v10_v1 = vld [vmem:[#allocation1 + $0x1] sm:$0x1]   ;;  %v6_v2 = vld [vmem:[#allocation1] sm:$0x1]  }
   0xa   :  { %11 = vrot.lane.b32.xlu0 %v10_v1, %s22_s0  ;;  %8 = vst.msk [vmem:[#allocation0] sm:$0x1] %vm7_vm0, %v6_v2  }
  0x7c   :  { %v12_v3 = vpop.permute.xlu0 %11  }
  0x7d   :  { %14 = vst.msk [vmem:[#allocation0] sm:$0x1] %vm13_vm1, %v12_v3  }
  0x84   :  { %v18_v4 = vld [vmem:[#allocation0] sm:$0x1] }
  0x85   :  { %20 = vst [vmem:[%s40_s1] sm:$0x1] %v18_v4 }

// kernel: model_forward.1
= control target key start
LH: loop header
LB: loop body
LE: loop exit
PB: predicated region body
PF: predicated region fallthrough
CT: control target
= control target key end

     0   :  { %vm27_vm0 = vcmask 130048   ;;  %v1162_v3 = vmov 0   ;;  %v252_v19 = vlaneseq  ;;  %vm460_vm11 = vcmask 130112   ;;  %s1314_s2 = inlined_call_operand.vmem [shape: f32[66,1], index: 2, kind: input, shape index: {}]   ;;  %s1315_s0 = inlined_call_operand.vmem [shape: f32[32,16], index: 0, kind: input, shape index: {}]   ;;  %s1316_s3 = inlined_call_operand.vmem [shape: f32[18,16], index: 3, kind: output, shape index: {}]   ;;  %s1317_s1 = inlined_call_operand.vmem [shape: f32[34,32], index: 1, kind: input, shape index: {}]  }
   0x1   :  { %v18_v0 = vld [vmem:[%s1314_s2] sm:$0xff]  ;;  %v19_v1 = vld [vmem:[%s1314_s2 + $0x8] sm:$0xff]  ;;  %1136 = vset.pattern.permute.xlu0 %v1162_v3  ;;  %1137 = vset.pattern.permute.xlu1 %v1162_v3  ;;  %v20_v5 = vld [vmem:[%s1314_s2 + $0x10] sm:$0xff]  ;;  %vm773_vm12 = vcmask 261120   ;;  %vm1165_vm13 = vmmov 0  }
   0x2   :  { %v1195_v2 = vld [vmem:[%s1315_s0] sm:$0xff]  ;;  %v1098_v4 = vpack.c.bf16 %v19_v1, %v18_v0  ;;  %v21_v6 = vld [vmem:[%s1314_s2 + $0x18] sm:$0xff]  ;;  %v1210_v8 = vld [vmem:[%s1315_s0 + $0x8] sm:$0xff]  ;;  %v1235_v21 = vshrl.u32 %v252_v19, 7 }
   0x3   :  { %1033 = vmatprep.mubr.msk.f32.mxu0 %vm27_vm0, %v1195_v2  ;;  %1043 = vmatprep.mubr.msk.f32.mxu1 %vm27_vm0, %v1195_v2  ;;  %v1102_v7 = vpack.c.bf16 %v21_v6, %v20_v5  ;;  %v1215_v9 = vld [vmem:[%s1315_s0 + $0x10] sm:$0xff]  ;;  %v1224_v10 = vld [vmem:[%s1315_s0 + $0x18] sm:$0xff] }
   0x4   :  { %1099 = vmatprep.subr.bf16.mxu0 %v1098_v4  ;;  %v254_v23 = vsub.s32 0, %v1235_v21 }
   0x5   :  { %1101 = vmatpush3.bf16.msra.mxu0 %v1098_v4  ;;  %1103 = vmatprep.subr.bf16.mxu1 %v1102_v7 }
   0x6   :  { %1105 = vmatpush3.bf16.msra.mxu1 %v1102_v7 }
   0x8   :  { %1034 = vmatmul.mubr.msk.f32.vlgmr.msra.gmra.mrb[0].mxu0 %vm27_vm0, %v1210_v8 }
   0x9   :  { %1036 = vmatprep.mubr.msk.f32.mxu0 %vm27_vm0, %v1215_v9  ;;  %1044 = vmatmul.mubr.msk.f32.vlgmr.msra.gmra.mrb[0].mxu1 %vm27_vm0, %v1210_v8 }
   0xa   :  { %1046 = vmatprep.mubr.msk.f32.mxu1 %vm27_vm0, %v1215_v9 }
   0xc   :  { %1037 = vmatmul.mubr.msk.f32.gmra.mrb[2].mxu0 %vm27_vm0, %v1224_v10 }
   0xd   :  { %1047 = vmatmul.mubr.msk.f32.gmra.mrb[2].mxu1 %vm27_vm0, %v1224_v10 }
  0xdb   :  { %v1035_v11 = vpop.f32.mrb[0].mxu0 }
  0xdc   :  { %249 = vperm.xlu0 %1136, %v1035_v11   ;;  %v106_v12 = vpop.f32.mrb[1].mxu0  ;;  %v1045_v13 = vpop.f32.mrb[0].mxu1 }
  0xdd   :  { %v191_v14 = vpop.f32.mrb[1].mxu1 }
  0xdf   :  { %v1038_v15 = vpop.f32.mrb[2].mxu0 }
  0xe0   :  { %244 = vperm.xlu0 %1136, %v106_v12   ;;  %327 = vperm.xlu1 %1137, %v1038_v15   ;;  %v116_v16 = vpop.f32.mrb[3].mxu0  ;;  %v1048_v17 = vpop.f32.mrb[2].mxu1 }
  0xe1   :  { %v201_v18 = vpop.f32.mrb[3].mxu1 }
  0xe4   :  { %322 = vperm.xlu1 %1137, %v116_v16  }
  0xfe   :  { %210 = vxpose.xlu0.b32.start [1/2] (short) (narrow) %v191_v14, 8 }
 0x102   :  { %211 = vxpose.xlu0.b32.end [2/2] (short) (narrow) %v1045_v13, 8 }
 0x10d   :  { %288 = vxpose.xlu1.b32.start [1/2] (short) (narrow) %v201_v18, 8 }
 0x111   :  { %289 = vxpose.xlu1.b32.end [2/2] (short) (narrow) %v1048_v17, 8 }
 0x15b   :  { %v250_v20 = vpop.permute.xlu0 %249 }
 0x15f   :  { %v245_v22 = vpop.permute.xlu0 %244  ;;  %v328_v28 = vpop.permute.xlu1 %327 }
 0x163   :  { %v323_v35 = vpop.permute.xlu1 %322 }
 0x17e   :  { %v226_v24 = vpop.trf.xlu0 }
 0x17f   :  { %v255_v25 = vrot.slane %v226_v24, %v254_v23 }
 0x181   :  { %v256_v26 = vadd.f32 %v255_v25, %v245_v22  ;;  %v257_v27 = vadd.f32 %v255_v25, %v250_v20 }
 0x183   :  { %vm258_vm1 = vcmp.ge.f32.partialorder %v256_v26, 0.0  ;;  %v260_v29 = vmul.f32 0.2, %v256_v26  ;;  %vm259_vm2 = vcmp.ge.f32.partialorder %v257_v27, 0.0  ;;  %v261_v30 = vmul.f32 0.2, %v257_v27 }
 0x185   :  { %v262_v31 = vsel %vm258_vm1, %v256_v26, %v260_v29  ;;  %v263_v32 = vsel %vm259_vm2, %v257_v27, %v261_v30  ;;  %v22_v26 = vld [vmem:[%s1314_s2 + $0x20] sm:$0xff]  ;;  %v23_v27 = vld [vmem:[%s1314_s2 + $0x28] sm:$0xff]  ;;  %v25_v29 = vld [vmem:[%s1314_s2 + $0x38] sm:$0xff]  ;;  %vm961_vm2 = vcmask 123904  }
 0x186   :  { %v264_v33 = vsel %vm27_vm0, %v262_v31, -inf  ;;  %v267_v34 = vsel %vm27_vm0, %v263_v32, -inf  ;;  %v26_v30 = vld [vmem:[%s1314_s2 + $0x40] sm:$0x3] }
 0x187   :  { %265 = vmax.xlane.f32.xlu0 %v264_v33  ;;  %268 = vmax.xlane.f32.xlu1 %v267_v34 }
 0x18d   :  { %v304_v36 = vpop.trf.xlu1 }
 0x18e   :  { %v333_v37 = vrot.slane %v304_v36, %v254_v23 }
 0x190   :  { %v334_v38 = vadd.f32 %v333_v37, %v323_v35  ;;  %v335_v39 = vadd.f32 %v333_v37, %v328_v28  ;;  %v24_v28 = vld [vmem:[%s1314_s2 + $0x30] sm:$0xff] }
 0x192   :  { %vm336_vm3 = vcmp.ge.f32.partialorder %v334_v38, 0.0  ;;  %v338_v40 = vmul.f32 0.2, %v334_v38  ;;  %v339_v41 = vmul.f32 0.2, %v335_v39  ;;  %vm337_vm4 = vcmp.ge.f32.partialorder %v335_v39, 0.0 }
 0x194   :  { %v340_v42 = vsel %vm336_vm3, %v334_v38, %v338_v40  ;;  %v341_v44 = vsel %vm337_vm4, %v335_v39, %v339_v41 }
 0x195   :  { %v342_v43 = vsel %vm27_vm0, %v340_v42, -inf  ;;  %v345_v45 = vsel %vm27_vm0, %v341_v44, -inf }
 0x196   :  { %343 = vmax.xlane.f32.xlu0 %v342_v43 }
 0x19a   :  { %346 = vmax.xlane.f32.xlu0 %v345_v45  ;;  %v416_v45 = vand.u32 127, %v252_v19 }
 0x19c   :  { %vm417_vm9 = vcmp.eq.s32.totalorder %v1235_v21, %v416_v45 }
 0x214   :  { %v266_v46 = vpop.xlane.xlu0 %265  ;;  %v269_v47 = vpop.xlane.xlu1 %268 }
 0x215   :  { %v270_v48 = vsub.f32 %v262_v31, %v266_v46  ;;  %v271_v49 = vsub.f32 %v263_v32, %v269_v47  ;;  %v455_v46 = vadd.s32 4294967288, %v416_v45  ;;  %v414_v47 = vadd.s32 8, %v1235_v21 }
 0x217   :  { %v272_v50 = vmul.f32 1.442695, %v270_v48  ;;  %v274_v51 = vmul.f32 1.442695, %v271_v49  ;;  %v1163_v48 = vmov 0.0   ;;  %vm418_vm10 = vcmp.eq.s32.totalorder %v414_v47, %v416_v45 }
 0x218   :  { %v975_v49 = vsel %vm417_vm9, 1.0, %v1163_v48 }
 0x219   :  { %1138 = vpow2.f32 %v272_v50  ;;  %v458_v50 = vsub.s32 %v455_v46, %v1235_v21  ;;  %v748_v46 = vld [vmem:[%s1317_s1] sm:$0xff] }
 0x21a   :  { %1140 = vpow2.f32 %v274_v51 }
 0x223   :  { %v1139_v52 = vpop.eup %1138  ;;  %v344_v53 = vpop.xlane.xlu0 %343 }
 0x224   :  { %v1141_v54 = vpop.eup %1140  ;;  %v348_v55 = vsub.f32 %v340_v42, %v344_v53  ;;  %v276_v56 = vsel %vm27_vm0, %v1139_v52, 0.0 }
 0x225   :  { %277 = vadd.xlane.f32.xlu1 %v276_v56  ;;  %v279_v57 = vsel %vm27_vm0, %v1141_v54, 0.0 }
 0x226   :  { %v350_v58 = vmul.f32 1.442695, %v348_v55  ;;  %280 = vadd.xlane.f32.xlu0 %v279_v57 }
 0x227   :  { %v347_v59 = vpop.xlane.xlu0 %346 }
 0x228   :  { %1142 = vpow2.f32 %v350_v58  ;;  %v349_v60 = vsub.f32 %v341_v44, %v347_v59  ;;  %v976_v58 = vsel %vm418_vm10, 1.0, %v1163_v48 }
 0x22a   :  { %v352_v61 = vmul.f32 1.442695, %v349_v60 }
 0x22c   :  { %1144 = vpow2.f32 %v352_v61 }
 0x232   :  { %v1143_v62 = vpop.eup %1142 }
 0x233   :  { %v354_v63 = vsel %vm27_vm0, %v1143_v62, 0.0 }
 0x234   :  { %355 = vadd.xlane.f32.xlu1 %v354_v63 }
 0x236   :  { %v1145_v0 = vpop.eup %1144 }
 0x237   :  { %v357_v1 = vsel %vm27_vm0, %v1145_v0, 0.0 }
 0x238   :  { %358 = vadd.xlane.f32.xlu0 %v357_v1 }
 0x2b2   :  { %v278_v3 = vpop.xlane.xlu1 %277 }
 0x2b3   :  { %1146 = vrcp.f32 %v278_v3  ;;  %v281_v4 = vpop.xlane.xlu0 %280 }
 0x2bd   :  { %v1147_v7 = vpop.eup %1146 }
 0x2be   :  { %v284_v12 = vmul.f32 %v1147_v7, %v1139_v52 }
 0x2c1   :  { %v356_v5 = vpop.xlane.xlu1 %355 }
 0x2c2   :  { %1148 = vrcp.f32 %v356_v5 }
 0x2c3   :  { %1150 = vrcp.f32 %v281_v4 }
 0x2c5   :  { %v359_v6 = vpop.xlane.xlu0 %358 }
 0x2c6   :  { %1152 = vrcp.f32 %v359_v6 }
 0x2cc   :  { %v1149_v11 = vpop.eup %1148 }
 0x2cd   :  { %v362_v13 = vmul.f32 %v1149_v11, %v1143_v62  ;;  %v1151_v14 = vpop.eup %1150 }
 0x2ce   :  { %v285_v18 = vmul.f32 %v1151_v14, %v1141_v54  ;;  %v453_v54 = vsub.s32 %v416_v45, %v1235_v21 }
 0x2cf   :  { %v364_v15 = vadd.f32 %v362_v13, %v284_v12 }
 0x2d0   :  { %v1153_v16 = vpop.eup %1152 }
 0x2d1   :  { %v366_v17 = vmul.f32 0.5, %v364_v15  ;;  %v363_v20 = vmul.f32 %v1153_v16, %v1145_v0  ;;  %v567_v15 = vmul.f32 2.0, %v976_v58 }
 0x2d3   :  { %v368_v22 = vsel %vm27_vm0, %v366_v17, 0.0  ;;  %v365_v23 = vadd.f32 %v363_v20, %v285_v18 }
 0x2d4   :  { %369 = vadd.xlane.f32.xlu1 %v368_v22 }
 0x2d5   :  { %v367_v24 = vmul.f32 0.5, %v365_v23 }
 0x2d7   :  { %v371_v25 = vsel %vm27_vm0, %v367_v24, 0.0 }
 0x2d8   :  { %372 = vadd.xlane.f32.xlu0 %v371_v25 }
 0x2ee   :  { %755 = vperm.xlu0 %1136, %v22_v26  }
 0x2f2   :  { %760 = vperm.xlu0 %1136, %v23_v27  }
 0x2f6   :  { %765 = vperm.xlu0 %1136, %v24_v28  }
 0x2fa   :  { %770 = vperm.xlu0 %1136, %v25_v29  }
 0x2fe   :  { %885 = vperm.xlu0 %1136, %v26_v30  }
 0x307   :  { %374 = vxpose.xlu1.b32.start [1/2] (short) (narrow) %v366_v17, 16 }
 0x30b   :  { %375 = vxpose.xlu1.b32.end [2/2] (short) (narrow) %v367_v24, 16 }
 0x361   :  { %v370_v31 = vpop.xlane.xlu1 %369 }
 0x362   :  { %1154 = vrsqrt.f32 %v370_v31  ;;  %vm425_vm6 = vcmp.eq.f32.partialorder %v370_v31, inf  ;;  %v428_v40 = vand.u32 2147483648, %v370_v31  ;;  %vm427_vm8 = vcmp.eq.f32.partialorder %v370_v31, 0.0 }
 0x363   :  { %v443_v56 = vmul.f32 %v975_v49, %v370_v31 }
 0x365   :  { %v373_v32 = vpop.xlane.xlu0 %372 }
 0x366   :  { %1156 = vrsqrt.f32 %v373_v32  ;;  %vm432_vm5 = vcmp.eq.f32.partialorder %v373_v32, inf  ;;  %v435_v38 = vand.u32 2147483648, %v373_v32  ;;  %vm434_vm7 = vcmp.eq.f32.partialorder %v373_v32, 0.0 }
 0x367   :  { %v444_v0 = vmul.f32 %v976_v58, %v373_v32 }
 0x36c   :  { %v1155_v33 = vpop.eup %1154 }
 0x36d   :  { %v424_v36 = vmul.f32 %v1155_v33, %v370_v31 }
 0x36f   :  { %v426_v39 = vsel %vm425_vm6, %v370_v31, %v424_v36 }
 0x370   :  { %v1157_v34 = vpop.eup %1156  ;;  %v429_v42 = vsel %vm427_vm8, %v428_v40, %v426_v39 }
 0x371   :  { %v431_v35 = vmul.f32 %v1157_v34, %v373_v32  ;;  %v437_v44 = vadd.f32 1e-07, %v429_v42 }
 0x373   :  { %v433_v37 = vsel %vm432_vm5, %v373_v32, %v431_v35 }
 0x374   :  { %v436_v41 = vsel %vm434_vm7, %v435_v38, %v433_v37 }
 0x375   :  { %v438_v43 = vadd.f32 1e-07, %v436_v41 }
 0x377   :  { %1158 = vrcp.f32 %v438_v43 }
 0x378   :  { %1160 = vrcp.f32 %v437_v44 }
 0x381   :  { %v1159_v52 = vpop.eup %1158 }
 0x382   :  { %v1161_v55 = vpop.eup %1160  ;;  %v459_v57 = vrot.slane %v1159_v52, %v458_v50 }
 0x383   :  { %v454_v62 = vrot.slane %v1161_v55, %v453_v54  ;;  %v1164_v54 = vmov 0.0|0.0  }
 0x385   :  { %v461_v21 = vsel %vm460_vm11, %v459_v57, %v454_v62 }
 0x387   :  { %v390_v51 = vpop.trf.xlu1 }
 0x388   :  { %v406_v53 = vadd.f32 %v390_v51, %v366_v17  ;;  %v566_v17 = vmul.f32 2.0, %v975_v49 }
 0x38a   :  { %v408_v19 = vmul.f32 0.5, %v406_v53  ;;  %v751_v53 = vld [vmem:[%s1317_s1 + $0x18] sm:$0xff] }
 0x38b   :  { %v391_v59 = vpop.trf.xlu1 }
 0x38c   :  { %410 = vst.msk [vmem:[%s1316_s3] sm:$0xff] %vm27_vm0, %v408_v19  ;;  %v445_v60 = vsub.f32 %v443_v56, %v408_v19  ;;  %v407_v61 = vadd.f32 %v391_v59, %v367_v24 }
 0x38e   :  { %v447_v63 = vmul.f32 %v1161_v55, %v445_v60  ;;  %v409_v1 = vmul.f32 0.5, %v407_v61  ;;  %v756_v55 = vpop.permute.xlu0 %755 }
 0x390   :  { %v475_v3 = vmul.f32 %v461_v21, %v447_v63  ;;  %411 = vst.msk [vmem:[%s1316_s3 + $0x8] sm:$0xff] %vm27_vm0, %v409_v1  ;;  %v446_v4 = vsub.f32 %v444_v0, %v409_v1 }
 0x392   :  { %v448_v5 = vmul.f32 %v1159_v52, %v446_v4  ;;  %v477_v6 = vsub.f32 %v975_v49, %v475_v3  ;;  %v761_v56 = vpop.permute.xlu0 %760 }
 0x394   :  { %v476_v7 = vmul.f32 %v461_v21, %v448_v5  ;;  %1053 = vmatprep.mubr.msk.f32.mxu0 %vm27_vm0, %v477_v6  ;;  %1060 = vmatprep.mubr.msk.f32.mxu1 %vm27_vm0, %v477_v6  ;;  %v479_v12 = vmul.f32 2.0, %v477_v6 }
 0x396   :  { %v478_v11 = vsub.f32 %v976_v58, %v476_v7  ;;  %v481_v27 = vadd.f32 %v975_v49, %v479_v12  ;;  %v652_v36 = vmul.f32 3.0, %v479_v12  ;;  %v766_v19 = vpop.permute.xlu0 %765 }
 0x398   :  { %v480_v13 = vmul.f32 2.0, %v478_v11 }
 0x39a   :  { %v1106_v14 = vpack.c.bf16 %v480_v13, %v479_v12  ;;  %v482_v25 = vadd.f32 %v976_v58, %v480_v13  ;;  %v653_v33 = vmul.f32 3.0, %v480_v13  ;;  %v771_v62 = vpop.permute.xlu0 %770 }
 0x39c   :  { %1107 = vmatprep.subr.bf16.mxu0 %v1106_v14 }
 0x39d   :  { %1109 = vmatpush3.bf16.msra.mxu0 %v1106_v14  ;;  %v752_v14 = vld [vmem:[%s1317_s1 + $0x20] sm:$0x3] }
 0x3a0   :  { %1054 = vmatmul.mubr.msk.f32.vlgmr.msra.gmra.mrb[4].mxu0 %vm27_vm0, %v478_v11 }
 0x3a1   :  { %1067 = vmatprep.mubr.msk.f32.mxu0 %vm27_vm0, %v1195_v2 }
 0x473   :  { %v1055_v16 = vpop.f32.mrb[4].mxu0 }
 0x474   :  { %v565_v18 = vmul.f32 4.0, %v1055_v16  ;;  %v555_v20 = vpop.f32.mrb[5].mxu0 }
 0x475   :  { %v564_v22 = vmul.f32 4.0, %v555_v20 }
 0x476   :  { %v569_v23 = vsub.f32 %v565_v18, %v567_v15  ;;  %v886_v15 = vpop.permute.xlu0 %885 }
 0x477   :  { %v568_v24 = vsub.f32 %v564_v22, %v566_v17 }
 0x478   :  { %v572_v26 = vmul.f32 0.5, %v569_v23 }
 0x479   :  { %v571_v28 = vmul.f32 0.5, %v568_v24 }
 0x47a   :  { %v574_v29 = vadd.f32 %v572_v26, %v482_v25 }
 0x47b   :  { %v573_v30 = vadd.f32 %v571_v28, %v481_v27  ;;  %v1110_v31 = vpack.c.bf16 %v572_v26, %v571_v28 }
 0x47d   :  { %1111 = vmatprep.subr.bf16.mxu1 %v1110_v31 }
 0x47e   :  { %1113 = vmatpush3.bf16.msra.mxu1 %v1110_v31 }
 0x481   :  { %1061 = vmatmul.mubr.msk.f32.vlgmr.msra.gmra.mrb[4].mxu1 %vm27_vm0, %v478_v11 }
 0x482   :  { %1081 = vmatprep.mubr.msk.f32.mxu1 %vm773_vm12, %v748_v46 }
 0x554   :  { %v1062_v2 = vpop.f32.mrb[4].mxu1 }
 0x555   :  { %v651_v32 = vmul.f32 6.0, %v1062_v2  ;;  %v641_v34 = vpop.f32.mrb[5].mxu1 }
 0x556   :  { %v650_v35 = vmul.f32 6.0, %v641_v34 }
 0x557   :  { %v655_v37 = vsub.f32 %v651_v32, %v653_v33 }
 0x558   :  { %v654_v38 = vsub.f32 %v650_v35, %v652_v36 }
 0x559   :  { %v658_v39 = vmul.f32 0.33333334, %v655_v37 }
 0x55a   :  { %v657_v40 = vmul.f32 0.33333334, %v654_v38 }
 0x55b   :  { %v660_v41 = vadd.f32 %v658_v39, %v574_v29 }
 0x55c   :  { %v659_v42 = vadd.f32 %v657_v40, %v573_v30 }
 0x55d   :  { %v662_v43 = vmul.f32 0.25, %v660_v41 }
 0x55e   :  { %v661_v44 = vmul.f32 0.25, %v659_v42 }
 0x560   :  { %v1114_v45 = vpack.c.bf16 %v662_v43, %v661_v44 }
 0x562   :  { %1115 = vmatprep.subr.bf16.mxu0 %v1114_v45 }
 0x563   :  { %1117 = vmatpush3.bf16.msra.mxu0 %v1114_v45 }
 0x564   :  { %1126 = vmatprep.subr.bf16.mxu0 %v1164_v54 }
 0x566   :  { %1068 = vmatmul.mubr.msk.f32.vlgmr.msra.gmra.mrb[6].mxu0 %vm27_vm0, %v1210_v8 }
 0x567   :  { %1070 = vmatprep.mubr.msk.f32.mxu0 %vm27_vm0, %v1215_v9  ;;  %v749_v9 = vld [vmem:[%s1317_s1 + $0x8] sm:$0xff] }
 0x56a   :  { %1071 = vmatmul.mubr.msk.f32.gmra.mrb[8].mxu0 %vm27_vm0, %v1224_v10  ;;  %v750_v10 = vld [vmem:[%s1317_s1 + $0x10] sm:$0xff] }
 0x56b   :  { %1095 = vmatprep.mubr.msk.f32.mxu0 %vm1165_vm13, %v1163_v48 }
 0x639   :  { %v1069_v47 = vpop.f32.mrb[6].mxu0 }
 0x63a   :  { %v729_v49 = vpop.f32.mrb[7].mxu0 }
 0x63b   :  { %v1118_v50 = vpack.c.bf16 %v1069_v47, %v729_v49 }
 0x63d   :  { %v1072_v51 = vpop.f32.mrb[8].mxu0  ;;  %1119 = vmatprep.subr.bf16.mxu1 %v1118_v50 }
 0x63e   :  { %v739_v52 = vpop.f32.mrb[9].mxu0  ;;  %1121 = vmatpush3.bf16.msra.mxu1 %v1118_v50 }
 0x63f   :  { %v1122_v8 = vpack.c.bf16 %v1072_v51, %v739_v52 }
 0x641   :  { %1123 = vmatprep.subr.bf16.mxu1 %v1122_v8 }
 0x642   :  { %1125 = vmatpush3.bf16.msra.mxu1 %v1122_v8 }
 0x645   :  { %1082 = vmatmul.mubr.msk.f32.vlgmr.msra.gmra.mrb[6].mxu1 %vm773_vm12, %v749_v9 }
 0x646   :  { %1084 = vmatprep.mubr.msk.f32.mxu1 %vm773_vm12, %v750_v10 }
 0x649   :  { %1085 = vmatmul.mubr.msk.f32.gmra.mrb[8].mxu1 %vm773_vm12, %v751_v53 }
 0x718   :  { %v1083_v57 = vpop.f32.mrb[6].mxu1 }
 0x719   :  { %v858_v58 = vadd.f32 %v1083_v57, %v761_v56  ;;  %v852_v59 = vpop.f32.mrb[7].mxu1 }
 0x71a   :  { %v853_v60 = vadd.f32 %v852_v59, %v756_v55 }
 0x71b   :  { %vm872_vm14 = vcmp.ge.f32.partialorder %v858_v58, 0.0  ;;  %v876_v61 = vmul.f32 0.01, %v858_v58 }
 0x71c   :  { %vm871_vm15 = vcmp.ge.f32.partialorder %v853_v60, 0.0  ;;  %v875_v63 = vmul.f32 0.01, %v853_v60  ;;  %v1086_v0 = vpop.f32.mrb[8].mxu1 }
 0x71d   :  { %v880_v1 = vsel %vm872_vm14, %v858_v58, %v876_v61  ;;  %v868_v21 = vadd.f32 %v1086_v0, %v771_v62  ;;  %v862_v3 = vpop.f32.mrb[9].mxu1 }
 0x71e   :  { %v879_v4 = vsel %vm871_vm15, %v853_v60, %v875_v63  ;;  %v863_v5 = vadd.f32 %v862_v3, %v766_v19 }
 0x71f   :  { %v1127_v6 = vpack.c.bf16 %v880_v1, %v879_v4  ;;  %vm874_vm0 = vcmp.ge.f32.partialorder %v868_v21, 0.0  ;;  %v878_v48 = vmul.f32 0.01, %v868_v21 }
 0x720   :  { %vm873_vm1 = vcmp.ge.f32.partialorder %v863_v5, 0.0  ;;  %v877_v7 = vmul.f32 0.01, %v863_v5 }
 0x721   :  { %v882_v11 = vsel %vm874_vm0, %v868_v21, %v878_v48  ;;  %1128 = vmatpush3.bf16.msra.mxu0 %v1127_v6 }
 0x722   :  { %v881_v12 = vsel %vm873_vm1, %v863_v5, %v877_v7  ;;  %1129 = vmatprep.subr.bf16.mxu0 %v1164_v54 }
 0x723   :  { %v1130_v13 = vpack.c.bf16 %v882_v11, %v881_v12 }
 0x725   :  { %1131 = vmatpush3.bf16.msra.mxu0 %v1130_v13 }
 0x728   :  { %1096 = vmatmul.mubr.msk.f32.vlgmr.msra.gmra.mrb[10].mxu0 %vm773_vm12, %v752_v14 }
 0x7fb   :  { %v957_v16 = vpop.f32.mrb[10].mxu0 }
 0x7fc   :  { %v958_v17 = vadd.f32 %v957_v16, %v886_v15  ;;  %v1097_v18 = vpop.f32.mrb[11].mxu0 }
 0x7fe   :  { %962 = vst.msk [vmem:[%s1316_s3 + $0x10] sm:$0x3] %vm961_vm2, %v958_v17 }

</bundles_post_ra>
